<compile_context>
chip_gen: v7x
topology: tpu7x:2x2x1
jax: 0.10.0
libtpu: 0.0.40
codegen_flags: <defaults>
</compile_context>

<pallas_src>
import jax
import jax.numpy as jnp
from jax.experimental import pallas as pl
from jax.experimental.pallas import tpu as pltpu


def _make_kernel(S, tile_s, n_s):
    needs_mask = (n_s * tile_s) > S

    def kernel(dec_ref, w_ref, bias_ref, enc_ref, out_ref, proj_ref):
        # dec_ref:  (B, D_dec)   w_ref: (E, D_dec)   bias_ref: (1, E)
        # enc_ref:  (tile_s, E)  out_ref: (n_s, tile_s)  proj_ref: (1, E) scratch
        b = pl.program_id(0)
        si = pl.program_id(1)

        # Hoisted Linear projection: once per batch row, not per S tile.
        @pl.when(si == 0)
        def _():
            dec_row = dec_ref[pl.ds(b, 1), :]                         # (1, D_dec)
            proj = jax.lax.dot_general(
                dec_row, w_ref[...],
                dimension_numbers=(((1,), (1,)), ((), ())),           # dec @ W^T
                preferred_element_type=jnp.float32)                   # (1, E)
            proj_ref[...] = proj + bias_ref[...]

        # Scores for this S tile: (1, E) . (tile_s, E)^T -> (1, tile_s), lane-dense.
        scores = jax.lax.dot_general(
            proj_ref[...], enc_ref[...],
            dimension_numbers=(((1,), (1,)), ((), ())),
            preferred_element_type=jnp.float32)                       # (1, tile_s)
        out_ref[pl.ds(si, 1), :] = scores

        # Finalize: softmax over the full resident score row on the last S tile.
        @pl.when(si == n_s - 1)
        def _():
            row = out_ref[...]                                        # (n_s, tile_s)
            if needs_mask:
                pos = (jax.lax.broadcasted_iota(jnp.int32, (n_s, tile_s), 0) * tile_s
                       + jax.lax.broadcasted_iota(jnp.int32, (n_s, tile_s), 1))
                row = jnp.where(pos < S, row, -jnp.inf)
            m = jnp.max(jnp.max(row, axis=1, keepdims=True), axis=0, keepdims=True)
            e = jnp.exp(row - m)
            denom = jnp.sum(jnp.sum(e, axis=1, keepdims=True), axis=0, keepdims=True)
            out_ref[...] = e * pl.reciprocal(denom, approx=False)

    return kernel


def attention_layer(dec_out, enc_outs, weight, bias, *, tile_s=None):
    """
    dec_out:  (B, D_dec) f32
    enc_outs: (S, B, E)  f32
    weight:   (E, D_dec) f32   (PyTorch nn.Linear weight layout)
    bias:     (E,)       f32
    returns:  (S, B)     f32   softmax attention scores over S
    """
    S, B, E = enc_outs.shape
    Bd, D_dec = dec_out.shape
    assert Bd == B and weight.shape == (E, D_dec) and bias.shape == (E,)
    f32 = jnp.float32

    dec_out = dec_out.astype(f32)
    weight = weight.astype(f32)
    bias2d = bias.astype(f32).reshape(1, E)

    # Layout fix: put S on the sublane axis of the streamed blocks (per-batch
    # (S, E) slabs are then contiguous for DMA).
    # TODO(synk): upstream producers should emit (B, S, E) directly so this
    # one-time relayout disappears.
    enc_bse = jnp.transpose(enc_outs.astype(f32), (1, 0, 2))          # (B, S, E)

    # Tile the S (streaming) axis.  Keep the double-buffered enc tile well
    # under the scoped-VMEM budget (tile would be re-derived smaller / deeper
    # buffered on v7x's 64 MiB VMEM).
    if tile_s is None:
        tile_s = 512
        while tile_s > 128 and 2 * tile_s * E * 4 > 24 * 1024 * 1024:
            tile_s //= 2
    if S <= tile_s:
        tile_s = max(8, -(-S // 8) * 8)          # single tile, sublane-aligned
    else:
        assert tile_s % 128 == 0, "tile_s must be a multiple of 128 when tiling S"
    n_s = -(-S // tile_s)                        # cdiv
    S_pad = n_s * tile_s
    if S_pad != S:
        enc_bse = jnp.pad(enc_bse, ((0, 0), (0, S_pad - S), (0, 0)))

    # Rough VMEM need: double-buffered enc tile + resident small operands.
    est = 4 * (2 * tile_s * E + 2 * S_pad + E * D_dec + B * D_dec + 2 * E)
    vmem_limit = int(min(96 * 2**20, max(32 * 2**20, 2 * est)))

    out = pl.pallas_call(
        _make_kernel(S, tile_s, n_s),
        out_shape=jax.ShapeDtypeStruct((B, n_s, tile_s), f32),
        grid_spec=pltpu.PrefetchScalarGridSpec(
            num_scalar_prefetch=0,
            grid=(B, n_s),                                       # S axis last
            in_specs=[
                pl.BlockSpec((B, D_dec), lambda b, si: (0, 0)),          # resident
                pl.BlockSpec((E, D_dec), lambda b, si: (0, 0)),          # resident
                pl.BlockSpec((1, E), lambda b, si: (0, 0)),              # resident
                pl.BlockSpec((None, tile_s, E), lambda b, si: (b, si, 0)),  # streamed
            ],
            out_specs=pl.BlockSpec((None, n_s, tile_s), lambda b, si: (b, 0, 0)),
            scratch_shapes=[pltpu.VMEM((1, E), f32)],            # proj row
        ),
        compiler_params=pltpu.CompilerParams(
            dimension_semantics=("parallel", "arbitrary"),
            vmem_limit_bytes=vmem_limit),
    )(dec_out, weight, bias2d, enc_bse)

    # (B, n_s, tile_s) -> (B, S_pad) is a free contiguous reshape; transpose to
    # the module's seq-first (S, B) output in the wrapper.
    return out.reshape(B, S_pad)[:, :S].T


def _reference(dec_out, enc_outs, weight, bias):
    proj = dec_out @ weight.T + bias                          # (B, E)
    scores = jnp.sum(enc_outs * proj[None, :, :], axis=2)     # (S, B)
    return jax.nn.softmax(scores, axis=0)


if __name__ == "__main__":
    key = jax.random.PRNGKey(0)

    # Config A: tiny shapes straight from the module (seq=8, batch=2, dims=32).
    # Config B: multi-tile S with padding + in-kernel masking exercised.
    configs = [
        dict(S=8, B=2, D_dec=32, E=32, tile_s=None),
        dict(S=200, B=3, D_dec=48, E=160, tile_s=128),
    ]

    for cfg in configs:
        S, B, D_dec, E = cfg["S"], cfg["B"], cfg["D_dec"], cfg["E"]
        k1, k2, k3, k4, key = jax.random.split(key, 5)
        dec_out = jax.random.normal(k1, (B, D_dec), dtype=jnp.float32)
        enc_outs = jax.random.normal(k2, (S, B, E), dtype=jnp.float32)
        weight = jax.random.normal(k3, (E, D_dec), dtype=jnp.float32) * 0.1
        bias = jax.random.normal(k4, (E,), dtype=jnp.float32) * 0.1

        out = attention_layer(dec_out, enc_outs, weight, bias, tile_s=cfg["tile_s"])
        out = jax.block_until_ready(out)
        ref = _reference(dec_out, enc_outs, weight, bias)

        assert out.shape == (S, B)
        assert jnp.allclose(out, ref, atol=1e-4, rtol=1e-4), f"mismatch for {cfg}"
        assert jnp.allclose(jnp.sum(out, axis=0), jnp.ones((B,)), atol=1e-4)

    print("KERNEL_OK")
</pallas_src>

<mosaic_0001>
module attributes {stable_mosaic.version = 11 : i64} {
  func.func @kernel(%arg0: i32, %arg1: i32, %arg2: memref<2x32xf32, #tpu.memory_space<vmem>>, %arg3: memref<32x32xf32, #tpu.memory_space<vmem>>, %arg4: memref<1x32xf32, #tpu.memory_space<vmem>>, %arg5: memref<1x8x32xf32, #tpu.memory_space<vmem>>, %arg6: memref<1x1x8xf32, #tpu.memory_space<vmem>>, %arg7: memref<1x32xf32, #tpu.memory_space<vmem>>) attributes {dimension_semantics = [#tpu.dimension_semantics<parallel>, #tpu.dimension_semantics<arbitrary>], iteration_bounds = array<i64: 2, 1>, scalar_prefetch = 0 : i64, scratch_operands = 1 : i64, tpu.core_type = #tpu.core_type<tc>, window_params = [{pipeline_mode = #tpu.pipeline_mode<synchronous>, transform_indices = @transform_0, window_bounds = array<i64: 2, 32>}, {pipeline_mode = #tpu.pipeline_mode<synchronous>, transform_indices = @transform_1, window_bounds = array<i64: 32, 32>}, {pipeline_mode = #tpu.pipeline_mode<synchronous>, transform_indices = @transform_2, window_bounds = array<i64: 1, 32>}, {transform_indices = @transform_3, window_bounds = array<i64: 1, 8, 32>}, {transform_indices = @transform_4, window_bounds = array<i64: 1, 1, 8>}]} {
    %c0_i32 = arith.constant 0 : i32
    %0 = arith.cmpi eq, %arg1, %c0_i32 : i32
    %1 = arith.extui %0 : i1 to i32
    %c0_i32_0 = arith.constant 0 : i32
    %2 = arith.cmpi ne, %1, %c0_i32_0 : i32
    scf.if %2 {
      %14 = arith.index_cast %arg0 : i32 to index
      %c0_9 = arith.constant 0 : index
      %15 = vector.load %arg2[%14, %c0_9] : memref<2x32xf32, #tpu.memory_space<vmem>>, vector<1x32xf32>
      %c0_10 = arith.constant 0 : index
      %c0_11 = arith.constant 0 : index
      %16 = vector.load %arg3[%c0_10, %c0_11] : memref<32x32xf32, #tpu.memory_space<vmem>>, vector<32x32xf32>
      %cst_12 = arith.constant dense<0.000000e+00> : vector<1x32xf32>
      %17 = tpu.matmul %15, %16, %cst_12 {dimension_numbers = #tpu.dot_dimension_numbers<[1], [1], [0], [0], [0, 0, 1, 0], [], []>} : vector<1x32xf32>, vector<32x32xf32>, vector<1x32xf32> -> vector<1x32xf32>
      %c0_13 = arith.constant 0 : index
      %c0_14 = arith.constant 0 : index
      %18 = vector.load %arg4[%c0_13, %c0_14] : memref<1x32xf32, #tpu.memory_space<vmem>>, vector<1x32xf32>
      %19 = arith.addf %17, %18 : vector<1x32xf32>
      %c0_15 = arith.constant 0 : index
      %c0_16 = arith.constant 0 : index
      %20 = vector.load %arg7[%c0_15, %c0_16] : memref<1x32xf32, #tpu.memory_space<vmem>>, vector<1x32xf32>
      tpu.vector_store %arg7[%c0_15, %c0_16], %19 {strides = array<i32>} : memref<1x32xf32, #tpu.memory_space<vmem>>, vector<1x32xf32>,
    } else {
    }
    %c0 = arith.constant 0 : index
    %c0_1 = arith.constant 0 : index
    %3 = vector.load %arg7[%c0, %c0_1] : memref<1x32xf32, #tpu.memory_space<vmem>>, vector<1x32xf32>
    %c0_2 = arith.constant 0 : index
    %c0_3 = arith.constant 0 : index
    %c0_4 = arith.constant 0 : index
    %4 = vector.load %arg5[%c0_2, %c0_3, %c0_4] : memref<1x8x32xf32, #tpu.memory_space<vmem>>, vector<1x8x32xf32>
    %5 = vector.shape_cast %4 : vector<1x8x32xf32> to vector<8x32xf32>
    %cst = arith.constant dense<0.000000e+00> : vector<1x8xf32>
    %6 = tpu.matmul %3, %5, %cst {dimension_numbers = #tpu.dot_dimension_numbers<[1], [1], [0], [0], [0, 0, 1, 0], [], []>} : vector<1x32xf32>, vector<8x32xf32>, vector<1x8xf32> -> vector<1x8xf32>
    %c0_5 = arith.constant 0 : index
    %7 = arith.index_cast %arg1 : i32 to index
    %c0_6 = arith.constant 0 : index
    %8 = vector.load %arg6[%c0_5, %7, %c0_6] : memref<1x1x8xf32, #tpu.memory_space<vmem>>, vector<1x1x8xf32>
    %9 = vector.shape_cast %8 : vector<1x1x8xf32> to vector<1x8xf32>
    %10 = vector.shape_cast %6 : vector<1x8xf32> to vector<1x1x8xf32>
    tpu.vector_store %arg6[%c0_5, %7, %c0_6], %10 {strides = array<i32>} : memref<1x1x8xf32, #tpu.memory_space<vmem>>, vector<1x1x8xf32>,
    %c0_i32_7 = arith.constant 0 : i32
    %11 = arith.cmpi eq, %arg1, %c0_i32_7 : i32
    %12 = arith.extui %11 : i1 to i32
    %c0_i32_8 = arith.constant 0 : i32
    %13 = arith.cmpi ne, %12, %c0_i32_8 : i32
    scf.if %13 {
      %c0_9 = arith.constant 0 : index
      %c0_10 = arith.constant 0 : index
      %c0_11 = arith.constant 0 : index
      %14 = vector.load %arg6[%c0_9, %c0_10, %c0_11] : memref<1x1x8xf32, #tpu.memory_space<vmem>>, vector<1x1x8xf32>
      %15 = vector.shape_cast %14 : vector<1x1x8xf32> to vector<1x8xf32>
      %cst_12 = arith.constant dense<0xFF800000> : vector<1xf32>
      %16 = vector.multi_reduction <maximumf>, %15, %cst_12 [1] : vector<1x8xf32> to vector<1xf32>
      %17 = vector.shape_cast %16 : vector<1xf32> to vector<1x1xf32>
      %cst_13 = arith.constant dense<0xFF800000> : vector<1xf32>
      %18 = vector.multi_reduction <maximumf>, %17, %cst_13 [0] : vector<1x1xf32> to vector<1xf32>
      %19 = vector.shape_cast %18 : vector<1xf32> to vector<1x1xf32>
      %20 = vector.broadcast %19 : vector<1x1xf32> to vector<1x8xf32>
      %21 = arith.subf %15, %20 : vector<1x8xf32>
      %22 = math.exp %21 : vector<1x8xf32>
      %cst_14 = arith.constant dense<0.000000e+00> : vector<1xf32>
      %23 = vector.multi_reduction <add>, %22, %cst_14 [1] : vector<1x8xf32> to vector<1xf32>
      %24 = vector.shape_cast %23 : vector<1xf32> to vector<1x1xf32>
      %cst_15 = arith.constant dense<0.000000e+00> : vector<1xf32>
      %25 = vector.multi_reduction <add>, %24, %cst_15 [0] : vector<1x1xf32> to vector<1xf32>
      %26 = vector.shape_cast %25 : vector<1xf32> to vector<1x1xf32>
      %27 = tpu.reciprocal %26 : vector<1x1xf32> -> vector<1x1xf32>
      %28 = vector.broadcast %27 : vector<1x1xf32> to vector<1x8xf32>
      %29 = arith.mulf %22, %28 : vector<1x8xf32>
      %c0_16 = arith.constant 0 : index
      %c0_17 = arith.constant 0 : index
      %c0_18 = arith.constant 0 : index
      %30 = vector.load %arg6[%c0_16, %c0_17, %c0_18] : memref<1x1x8xf32, #tpu.memory_space<vmem>>, vector<1x1x8xf32>
      %31 = vector.shape_cast %30 : vector<1x1x8xf32> to vector<1x8xf32>
      %32 = vector.shape_cast %29 : vector<1x8xf32> to vector<1x1x8xf32>
      tpu.vector_store %arg6[%c0_16, %c0_17, %c0_18], %32 {strides = array<i32>} : memref<1x1x8xf32, #tpu.memory_space<vmem>>, vector<1x1x8xf32>,
    } else {
    }
    return
  }
  func.func @transform_0(%arg0: i32, %arg1: i32) -> (i32, i32) {
    %c0_i32 = arith.constant 0 : i32
    %c0_i32_0 = arith.constant 0 : i32
    %c0_i32_1 = arith.constant 0 : i32
    return %c0_i32, %c0_i32_0 : i32, i32
  }
  func.func @transform_1(%arg0: i32, %arg1: i32) -> (i32, i32) {
    %c0_i32 = arith.constant 0 : i32
    %c0_i32_0 = arith.constant 0 : i32
    %c0_i32_1 = arith.constant 0 : i32
    return %c0_i32, %c0_i32_0 : i32, i32
  }
  func.func @transform_2(%arg0: i32, %arg1: i32) -> (i32, i32) {
    %c0_i32 = arith.constant 0 : i32
    %c0_i32_0 = arith.constant 0 : i32
    %c0_i32_1 = arith.constant 0 : i32
    return %c0_i32, %c0_i32_0 : i32, i32
  }
  func.func @transform_3(%arg0: i32, %arg1: i32) -> (i32, i32, i32) {
    %c0_i32 = arith.constant 0 : i32
    %c0_i32_0 = arith.constant 0 : i32
    return %arg0, %arg1, %c0_i32 : i32, i32, i32
  }
  func.func @transform_4(%arg0: i32, %arg1: i32) -> (i32, i32, i32) {
    %c0_i32 = arith.constant 0 : i32
    %c0_i32_0 = arith.constant 0 : i32
    %c0_i32_1 = arith.constant 0 : i32
    return %arg0, %c0_i32, %c0_i32_0 : i32, i32, i32
  }
}

</mosaic_0001>

<bundles_post_ra>
// kernel: tpu_custom_call.1
= control target key start
LH: loop header
LB: loop body
LE: loop exit
PB: predicated region body
PF: predicated region fallthrough
CT: control target
= control target key end

     0   :  { %9 = vsyncpa [#allocation4], 0  ;;  %s1172_s0 = inlined_call_operand.hbm [shape: f32[2,32], index: 0, kind: input, shape index: {}]   ;;  %s1173_s1 = inlined_call_operand.hbm [shape: f32[32,32], index: 1, kind: input, shape index: {}]   ;;  %s1174_s2 = inlined_call_operand.vmem [shape: f32[1,32], index: 2, kind: input, shape index: {}]   ;;  %s1175_s3 = inlined_call_operand.hbm [shape: f32[2,8,32], index: 3, kind: input, shape index: {}]   ;;  %s1176_s4 = inlined_call_operand.hbm [shape: f32[2,1,8], index: 4, kind: output, shape index: {}]  }
   0x1   :  { %10 = vsyncpa [#allocation7], 0 }
   0x2   :  { %11 = vsyncpa [#allocation5], 0 }
   0x3   :  { %13 = vsyncpa [#allocation5 + $0x1], 0  ;;  %s916_s15 = smov 0   ;;  %s918_s16 = smov 0  }
   0x4   :  { %s920_s17 = smov 0   ;;  %s922_s18 = smov 0  }
   0x5   :  { %s924_s19 = smov 0   ;;  %s926_s20 = smov 0  }
   0x6 LB: > { %s947_s21 = sadd.s32 4294967295, %s880_s20   ;;  %s560_s22 = sadd.s32 4294967294, %s880_s20   ;;  %s880_s20 = sphi %s926_s20, %s19_s20   ;;  %s876_s19 = sphi %s924_s19, %s1199_s19   ;;  %s872_s18 = sphi %s922_s18, %s1198_s18   ;;  %s868_s17 = sphi %s920_s17, %s1197_s17   ;;  %s864_s16 = sphi %s918_s16, %s1196_s16   ;;  %s860_s15 = sphi %s916_s15, %s1195_s15  }
   0x7   : > { %p116_p0 = scmp.ne.s32.totalorder %s864_s16, %s860_s15  ;;  %p1177_p1 = scmp.eq.s32.totalorder %s947_s21, 0 }
   0x8   : > { %p146_p3 = scmp.eq.s32.totalorder %s560_s22, 1  ;;  %p561_p5 = scmp.ge.s32.totalorder %s880_s20, 1 }
   0x9   : > { %p956_p4 = por %p1177_p1, %p116_p0  ;;  %p153_p7 = scmp.lt.s32.totalorder %s880_s20, 3 }
   0xa   : > { %p961_p6 = por %p146_p3, %p116_p0  ;;  %s882_s26 = smov [#allocation3]  }
   0xb   : > { %s1180_s23 = scalar_select %p956_p4, 1, 0 }
   0xc   : > { %s1181_s24 = scalar_select %p961_p6, 1, 0 }
   0xd   : > { %p966_p8 = pnand %p561_p5, %p153_p7  ;;  %s166_s27 = sshll.u32 %s882_s26, 4  ;;  %s167_s27 = int_to_ptr.vmem [resolvable:$true] %s166_s27 }
   0xe   : > { %s883_s28 = smov [#allocation6]   ;;  %s704_s7 = scalar_lea.hbm %s1172_s0, 32 }
   0xf   : > { %s1182_s25 = scalar_select %p966_p8, 1, 0 }
  0x10   : > { %p624_p10 = pneg %p966_p8  ;;  %s176_s29 = sshll.u32 %s883_s28, 4  ;;  %s979_s29 = int_to_ptr.vmem [resolvable:$true] %s176_s29 }
  0x11   : > { %p705_p12 = scmp.ne.s32.totalorder %s1172_s0, %s704_s7  ;;  %p711_p5 = scmp.lt.u32.totalorder %s704_s7, %s1172_s0 }
  0x12   : > { %p975_p11 = pnand %p624_p10, %p1177_p1 }
  0x14   : > { %p706_p13 = pneg %p975_p11 }
  0x16   : > { %p707_p0 = pnand %p706_p13, %p705_p12 }
  0x18   : > { %p708_p3 = pneg %p707_p0 }
  0x1a   : > { %p713_p7 = pnand %p711_p5, %p708_p3 }
  0x1c   : > { %716 = shalt.err (!%p713_p7)
}
  0x1d   : > { %s717_s12 = scalar_lea.vmem %s167_s27, 32  ;;  %p725_p2 = scmp.lt.s32.totalorder %s167_s27, %s167_s27 }
  0x1e   : > { %p718_p10 = scmp.ne.s32.totalorder %s167_s27, %s717_s12  ;;  %p726_p6 = scmp.lt.s32.totalorder %s717_s12, %s717_s12 }
  0x20   : > { %p720_p9 = pnand %p718_p10, %p706_p13  ;;  %p727_p4 = por %p726_p6, %p725_p2 }
  0x22   : > { %p721_p1 = pneg %p720_p9 }
  0x24   : > { %p728_p8 = pnand %p727_p4, %p721_p1 }
  0x26   : > { %731 = shalt.err (!%p728_p8)
}
  0x27   : > { %627 = dma.hbm_to_vmem [thread:$0]  (!%p975_p11), %s1172_s0, 32, %s167_s27, [#allocation4]  }
  0x28   : > { %s732_s28 = scalar_lea.hbm %s1173_s1, 512 }
  0x29   : > { %p733_p9 = scmp.ne.s32.totalorder %s1173_s1, %s732_s28  ;;  %p739_p4 = scmp.lt.u32.totalorder %s732_s28, %s1173_s1 }
  0x2b   : > { %p735_p2 = pnand %p733_p9, %p706_p13 }
  0x2d   : > { %p736_p1 = pneg %p735_p2 }
  0x2f   : > { %p741_p6 = pnand %p739_p4, %p736_p1 }
  0x31   : > { %744 = shalt.err (!%p741_p6)
}
  0x32   : > { %s745_s27 = scalar_lea.vmem %s979_s29, 512  ;;  %p753_p3 = scmp.lt.s32.totalorder %s979_s29, %s979_s29 }
  0x33   : > { %p746_p8 = scmp.ne.s32.totalorder %s979_s29, %s745_s27  ;;  %p754_p5 = scmp.lt.s32.totalorder %s745_s27, %s745_s27 }
  0x35   : > { %p748_p12 = pnand %p746_p8, %p706_p13  ;;  %p755_p7 = por %p754_p5, %p753_p3 }
  0x37   : > { %p749_p0 = pneg %p748_p12 }
  0x39   : > { %p756_p10 = pnand %p755_p7, %p749_p0 }
  0x3b   : > { %759 = shalt.err (!%p756_p10)
}
  0x3c   : > { %s884_s9 = smov 128   ;;  %s885_s10 = smov 8  }
  0x3d   : > { %630 = dma.hbm_to_vmem [thread:$0]  (!%p975_p11), %s1173_s1, 512, %s979_s29, [#allocation7], %s884_s9, %s884_s9, %s885_s10  }
  0x3e   : > { %s31_s13 = sadd.s32 1, %s876_s19  ;;  %s103_s14 = sadd.s32 1, %s868_s17 }
  0x3f   : > { %p33_p13 = scmp.ge.s32.totalorder %s31_s13, 2  ;;  %p110_p9 = scmp.ne.s32.totalorder %s868_s17, %s864_s16 }
  0x40   : > { %p111_p2 = scmp.eq.s32.totalorder %s880_s20, 0  ;;  %p641_p1 = scmp.lt.s32.totalorder %s880_s20, 2 }
  0x41   : > { %s1201_s13 = smov (%p33_p13, %s31_s13), 0  ;;  %p1184_p6 = scmp.eq.s32.totalorder %s947_s21, 1 }
  0x42   : > { %p112_p4 = por %p111_p2, %p110_p9  ;;  %s98_s30 = ssub.s32 %s876_s19, %s1201_s13 }
  0x43   : > { %p1038_p8 = por %p1184_p6, %p110_p9  ;;  %s193_s26 = sand.u32 1, %s880_s20  }
  0x44   : > { %p101_p12 = scmp.eq.s32.totalorder %s98_s30, 0  ;;  %s195_s28 = sand.u32 1, %s868_s17  }
  0x45   : > { %s566_s29 = sshll.u32 %s876_s19, 7  ;;  %s565_s6 = sshll.u32 %s195_s28, 3 }
  0x46   : > { %s1048_s5 = scalar_select %p101_p12, %s868_s17, %s103_s14  }
  0x47   : > { %s1053_s27 = scalar_lea.hbm %s1175_s3, %s566_s29  ;;  %p1055_p11 = pnand %p641_p1, %p112_p4 }
  0x48   : > { %s197_s10 = scalar_lea.vmem [#allocation8], %s565_s6  ;;  %s194_s12 = scalar_lea.sflag [#allocation4], %s193_s26 }
  0x49   : > { %s205_s11 = sshll.u32 %s197_s10, 4  ;;  %s760_s14 = scalar_lea.hbm %s1053_s27, 128  ;;  %s1059_s11 = int_to_ptr.vmem [resolvable:$true] %s205_s11 }
  0x4a   : > { %p761_p0 = scmp.ne.s32.totalorder %s1053_s27, %s760_s14  ;;  %p762_p3 = pneg %p1055_p11 }
  0x4b   : > { %s765_s29 = scalar_lea.hbm %s1175_s3, 256  ;;  %p766_p10 = scmp.lt.u32.totalorder %s1053_s27, %s1175_s3 }
  0x4c   : > { %p763_p5 = pnand %p762_p3, %p761_p0  ;;  %p767_p13 = scmp.lt.u32.totalorder %s765_s29, %s760_s14 }
  0x4d   : > { %p769_p2 = scmp.lt.u32.totalorder %s760_s14, %s1053_s27 }
  0x4e   : > { %p764_p7 = pneg %p763_p5  ;;  %p768_p9 = por %p767_p13, %p766_p10 }
  0x50   : > { %p770_p1 = por %p769_p2, %p768_p9 }
  0x52   : > { %p771_p4 = pnand %p770_p1, %p764_p7 }
  0x54   : > { %774 = shalt.err (!%p771_p4)
}
  0x55   : > { %s775_s26 = scalar_lea.vmem %s1059_s11, 128  ;;  %s886_s6 = smov [#allocation8]  }
  0x56   : > { %p776_p6 = scmp.ne.s32.totalorder %s1059_s11, %s775_s26  ;;  %s780_s10 = sshll.u32 %s886_s6, 4  ;;  %s781_s10 = int_to_ptr.vmem [resolvable:$false] %s780_s10 }
  0x57   : > { %s782_s30 = scalar_lea.vmem %s781_s10, 256  ;;  %p783_p5 = scmp.lt.s32.totalorder %s1059_s11, %s781_s10 }
  0x58   : > { %p778_p12 = pnand %p776_p6, %p762_p3  ;;  %p784_p10 = scmp.lt.s32.totalorder %s782_s30, %s775_s26 }
  0x5a   : > { %p779_p0 = pneg %p778_p12  ;;  %p785_p13 = por %p784_p10, %p783_p5 }
  0x5c   : > { %p786_p9 = pnand %p785_p13, %p779_p0 }
  0x5e   : > { %789 = shalt.err (!%p786_p9)
}
  0x5f   : > { %634 = dma.hbm_to_vmem [thread:$0]  (!%p1055_p11), %s1053_s27, 128, %s1059_s11, %s194_s12  }
  0x60   : > { %p1187_p7 = scmp.ne.s32.totalorder %s1182_s25, 0 }
  0x61   : > { %p1188_p3 = scmp.eq.s32.totalorder (!%p1187_p7), %s947_s21, 0 }
  0x62   : > { %214 = sbr.rel (%p1187_p7) target bundleno = 904 (0x388), region = 36 }
  0x69   : > { %843 = dma.done.wait (%p1188_p3), [#allocation4], 32   ;;  %p1189_p2 = pmov %p1188_p3 }
  0x6b   : > { %845 = vsyncadd (%p1189_p2), [#allocation4], 4294967264  ;;  %p1190_p1 = pmov %p1189_p2 }
  0x6d   : > { %847 = dma.done.wait (%p1190_p1), [#allocation7], 512   ;;  %p1191_p4 = pmov %p1190_p1 }
  0x6e   : > { %s224_s9 = sand.u32 1, %s947_s21   ;;  %s1098_s27 = sand.u32 1, %s864_s16  }
  0x6f   : > { %849 = vsyncadd (%p1191_p4), [#allocation7], 4294966784  ;;  %s570_s25 = sshll.u32 %s1098_s27, 3  ;;  %s225_s11 = scalar_lea.sflag [#allocation4], %s224_s9 }
  0x70   : > { %s228_s12 = scalar_lea.vmem [#allocation8], %s570_s25  ;;  %p1192_p11 = scmp.ne.s32.totalorder %s1180_s23, 0 }
  0x72   : > { %851 = dma.done.wait (%p1192_p11), %s225_s11, 128  }
  0x73   : > { %853 = vsyncadd (%p1192_p11), %s225_s11, 4294967168  ;;  %v887_v0 = vmov 0.0|0.0   ;;  %vm888_vm0 = vmmov 0   ;;  %v889_v1 = vmov 0.0   ;;  %vm263_vm1 = vcmask 261120   ;;  %v258_v2 = vld [vmem:[#allocation6] sm:$0xff] }
  0x74   : > { %604 = vmatprep.subr.bf16.mxu0 %v887_v0  ;;  %596 = vmatprep.mubr.msk.f32.mxu0 %vm888_vm0, %v889_v1  ;;  %v259_v3 = vld [vmem:[#allocation6 + $0x8] sm:$0xff]  ;;  %vm606_vm2 = vmpackc.low %vm263_vm1, %vm263_vm1  ;;  %v260_v5 = vld [vmem:[#allocation6 + $0x10] sm:$0xff]  ;;  %s256_s21 = scalar_lea.vmem [#allocation3], %s872_s18  ;;  %vm349_vm3 = vcmask 253952   ;;  %vm431_vm4 = vcmask 57344   ;;  %s251_s28 = scalar_lea.vmem [#allocation9], %s1098_s27 }
  0x75   : > { %599 = vmatprep.subr.mxu1 %v889_v1  ;;  %601 = vmatprep.mubr.msk.f32.mxu1 %vm888_vm0, %v889_v1  ;;  %v605_v4 = vpack.c.bf16 %v259_v3, %v258_v2  ;;  %v261_v6 = vld [vmem:[#allocation6 + $0x18] sm:$0xff]  ;;  %v352_v9 = vld [vmem:[%s228_s12] sm:$0xff]  ;;  %s578_s29 = sshll.u32 %s872_s18, 4  ;;  %s463_s7 = sshll.u32 %s251_s28, 4  ;;  %s1124_s7 = int_to_ptr.vmem [resolvable:$true] %s463_s7 }
  0x76   : > { %v609_v7 = vpack.c.bf16 %v261_v6, %v260_v5  ;;  %v257_v8 = vld [vmem:[%s256_s21] sm:$0x1]  ;;  %600 = vmatpush3.xpose.msk.msra.mxu1 %vm263_vm1, %v352_v9  ;;  %s1122_s6 = scalar_lea.hbm %s1176_s4, %s578_s29  ;;  %s451_s10 = scalar_lea.sflag [#allocation5], %s1098_s27 }
  0x77   : > { %607 = vmatpush3.bf16.xpose.msk.msra.mxu0 %vm606_vm2, %v605_v4  ;;  %v262_v10 = vld [vmem:[%s1174_s2] sm:$0x1]  ;;  %s790_s30 = scalar_lea.vmem %s1124_s7, 16  ;;  %s890_s18 = smov [#allocation9]  }
  0x78   : > { %608 = vmatprep.subr.bf16.mxu0 %v887_v0  ;;  %p791_p6 = scmp.ne.s32.totalorder %s1124_s7, %s790_s30  ;;  %s794_s9 = sshll.u32 %s890_s18, 4  ;;  %s795_s9 = int_to_ptr.vmem [resolvable:$false] %s794_s9 }
  0x79   : > { %s796_s25 = scalar_lea.vmem %s795_s9, 32  ;;  %p797_p5 = scmp.lt.s32.totalorder %s1124_s7, %s795_s9 }
  0x7a   : > { %p792_p12 = pnand %p791_p6, %p1038_p8  ;;  %p798_p10 = scmp.lt.s32.totalorder %s796_s25, %s790_s30 }
  0x7c   : > { %p793_p0 = pneg %p792_p12  ;;  %p799_p13 = por %p798_p10, %p797_p5 }
  0x7e   : > { %p800_p9 = pnand %p799_p13, %p793_p0 }
  0x7f   : > { %611 = vmatpush3.bf16.xpose.msk.msra.mxu0 %vm606_vm2, %v609_v7 }
  0x86   : > { %597 = vmatmul.mubr.msk.f32.vlgmr.msra.gmra.mrb[0].mxu0 %vm263_vm1, %v257_v8 }
 0x159   : > { %v345_v11 = vpop.f32.mrb[0].mxu0 }
 0x15a   : > { %v346_v12 = vadd.f32 %v345_v11, %v262_v10  ;;  %v598_v13 = vpop.f32.mrb[1].mxu0 }
 0x15c   : > { %350 = vst.msk [vmem:[#allocation2] sm:$0x1] %vm349_vm3, %v346_v12 }
 0x163   : > { %v351_v14 = vld [vmem:[#allocation2] sm:$0x1] }
 0x164   : > { %602 = vmatmul.mubr.msk.f32.vlgmr.msra.gmra.mrb[0].mxu1 %vm263_vm1, %v351_v14 }
 0x237   : > { %v426_v15 = vpop.f32.mrb[0].mxu1 }
 0x238   : > { %432 = vst.msk [vmem:[%s251_s28] sm:$0x1] %vm431_vm4, %v426_v15  ;;  %v603_v16 = vpop.f32.mrb[1].mxu1 }
 0x23f   : > { %v436_v17 = vld [vmem:[%s251_s28] sm:$0x1] }
 0x240   : > { %v437_v18 = vsel %vm431_vm4, %v436_v17, -inf }
 0x241   : > { %438 = vmax.xlane.f32.xlu0 %v437_v18 }
 0x2ce   : > { %v439_v19 = vpop.xlane.xlu0 %438 }
 0x2cf   : > { %v440_v20 = vsub.f32 %v436_v17, %v439_v19 }
 0x2d1   : > { %v441_v21 = vmul.f32 1.442695, %v440_v20 }
 0x2d3   : > { %700 = vpow2.f32 %v441_v21 }
 0x2dd   : > { %v701_v22 = vpop.eup %700 }
 0x2de   : > { %v443_v23 = vsel %vm431_vm4, %v701_v22, 0.0 }
 0x2df   : > { %444 = vadd.xlane.f32.xlu0 %v443_v23 }
 0x36c   : > { %v445_v24 = vpop.xlane.xlu0 %444 }
 0x36d   : > { %702 = vrcp.f32 %v445_v24 }
 0x377   : > { %v703_v25 = vpop.eup %702 }
 0x378   : > { %v448_v26 = vmul.f32 %v703_v25, %v701_v22 }
 0x37a   : > { %449 = vst.msk [vmem:[%s251_s28] sm:$0x1] %vm431_vm4, %v448_v26 }
 0x37b   : > { %803 = shalt.err (!%p800_p9)
}
 0x37c   : > { %s804_s27 = scalar_lea.hbm %s1122_s6, 16  ;;  %s808_s21 = scalar_lea.hbm %s1176_s4, 32 }
 0x37d   : > { %p805_p7 = scmp.ne.s32.totalorder %s1122_s6, %s804_s27  ;;  %p809_p1 = scmp.lt.u32.totalorder %s1122_s6, %s1176_s4 }
 0x37e   : > { %p810_p4 = scmp.lt.u32.totalorder %s808_s21, %s804_s27  ;;  %p812_p6 = scmp.lt.u32.totalorder %s804_s27, %s1122_s6 }
 0x37f   : > { %p806_p3 = pnand %p805_p7, %p1038_p8 }
 0x380   : > { %p811_p11 = por %p810_p4, %p809_p1 }
 0x381   : > { %p807_p2 = pneg %p806_p3 }
 0x382   : > { %p813_p12 = por %p812_p6, %p811_p11 }
 0x384   : > { %p814_p0 = pnand %p813_p12, %p807_p2 }
 0x386   : > { %817 = shalt.err (!%p814_p0)
}
 0x387   : > { %622 = dma.vmem_to_hbm [thread:$0]  (%p1038_p8), %s1124_s7, 16, %s1122_s6, %s451_s10  }
 0x388 PF: > { %s475_s28 = sand.u32 1, %s860_s15   ;;  %p1193_p5 = scmp.ne.s32.totalorder %s1181_s24, 0 }
 0x389   : > { %p1194_p10 = scmp.ge.s32.totalorder %s880_s20, 2  ;;  %s476_s29 = scalar_lea.sflag [#allocation5], %s475_s28 }
 0x38b   : > { %p636_p13 = pnand %p1194_p10, %p1193_p5 }
 0x38d   : > { %855 = dma.done.wait (!%p636_p13), %s476_s29, 16  }
 0x38e   : > { %857 = vsyncadd (!%p636_p13), %s476_s29, 4294967280  ;;  %s19_s20 = sadd.s32 1, %s880_s20   ;;  %s1195_s15 = smov %s864_s16 }
 0x38f   : > { %p16_p9 = scmp.ge.s32.totalorder %s19_s20, 4   ;;  %s1196_s16 = smov %s868_s17 }
 0x390   : > { %s1197_s17 = smov %s1048_s5  ;;  %s1198_s18 = smov %s876_s19 }
 0x391   : > { %s1199_s19 = smov %s1201_s13  ;;  %18 = sbr.rel (!%p16_p9) target bundleno = 6 (0x6), region = 98 }
 0x398   :  { %480 = vsyncpa [#allocation4], 1 }
 0x399   :  { %482 = vsyncpa [#allocation4 + $0x1], 1 }
 0x39a   :  { %483 = vsyncpa [#allocation7], 1 }
 0x39b   :  { %484 = vsyncpa [#allocation5], 1 }
 0x39c   :  { %486 = vsyncpa [#allocation5 + $0x1], 1 }

</bundles_post_ra>
